<compile_context>
chip_gen: v5e
topology: v5e:2x2
jax: 0.10.0
libtpu: 0.0.40
codegen_flags: <defaults>
</compile_context>

<pallas_src>
import functools
import math

import numpy as np
import jax
import jax.numpy as jnp
from jax import lax
from jax.experimental import pallas as pl
from jax.experimental.pallas import tpu as pltpu

_LANE = 128
_SUBLANE = 8


def _round_up(n, m):
    return ((n + m - 1) // m) * m


def _pad2d(a, rows, cols):
    """Zero-pad a 2-D array to (rows, cols)."""
    a = jnp.asarray(a)
    return jnp.zeros((rows, cols), a.dtype).at[: a.shape[0], : a.shape[1]].set(a)


def _elementwise_dtype():
    """bf16 VPU path on v6e/v7x; f32 on v5e and older (no bf16 VPU/EUP)."""
    try:
        kind = jax.devices()[0].device_kind.lower()
    except Exception:
        return jnp.float32
    if any(tag in kind for tag in ("v6", "v7")):
        return jnp.bfloat16
    return jnp.float32


def _choose_tb(batch, q, max_rows=2048, min_split_rows=512):
    """Batches per grid step.

    Returns tb such that either tb == batch (full-dim blocks, single step) or tb is
    aligned so that both (tb, Lp) and the lane-dense (A8, tb*q) output block satisfy
    the (8, 128) block-shape constraints.  Prefers divisors of batch (no ragged tile)
    and keeps >= 2 grid steps when there is enough work (v7x megacore).
    """
    align = math.lcm(_SUBLANE, _LANE // math.gcd(q, _LANE))
    if batch * q <= max_rows:
        # Whole problem fits in one step.  Split in two when the halves are legal
        # aligned tiles with enough work each, so both v7x cores participate.
        if batch * q >= min_split_rows and (batch // 2) % align == 0:
            return batch // 2
        return batch
    # Multiple steps required.
    max_tb = max(align, (max_rows // q) // align * align)
    best_div = 0
    for d in range(align, max_tb + 1, align):
        if batch % d == 0:
            best_div = d
    if best_div * q >= 256:
        return best_div
    # Balanced fallback (Pallas clamps/masks the ragged last tile).
    n_steps = -(-batch // max_tb)
    return min(max_tb, _round_up(-(-batch // n_steps), align))


# ----------------------------- Pallas kernel -----------------------------

def iqn_kernel(q_ref, x_ref, pis_ref,
               w1_ref, b1_ref, w2_ref, b2_ref, w3t_ref, b3t_ref,
               out_ref, *, n_quantiles, tb, ew_dtype):
    # q_ref:   (TM, 1)   f32  quantiles for this row tile (TM = tb * n_quantiles)
    # x_ref:   (tb, Lp)  f32  latent rows for this tile's batches (repeated in-kernel)
    # pis_ref: (1, Ep)   f32
    # w1:  (Ep, Lp) bf16, b1:  (1, Lp) f32   -- quantile embed net
    # w2:  (Lp, Hp) bf16, b2:  (1, Hp) f32   -- iqn head Linear 1
    # w3t: (A8, Hp) bf16, b3t: (A8, 1) f32   -- iqn head Linear 2, stored transposed
    # out_ref: (A8, TM) f32  lane-dense transposed output tile
    mm_dtype = w1_ref.dtype

    # cos(quantiles * pis): (TM,1)*(1,Ep) broadcast, elementwise f32 (EUP).
    cos_emb = jnp.cos(q_ref[...] * pis_ref[...])                           # (TM, Ep)

    # Quantile embedding net: Linear + ReLU (MXU, f32 accumulate).
    qe = jnp.dot(cos_emb.astype(mm_dtype), w1_ref[...],
                 preferred_element_type=jnp.float32) + b1_ref[...]
    qe = jnp.maximum(qe, 0.0).astype(ew_dtype)                             # (TM, Lp)

    # Repeat the latent over the quantile axis inside the kernel
    # (replaces torch `.repeat(1, Q, 1)` without materializing x_rep in HBM).
    x_tile = x_ref[...].astype(ew_dtype)                                   # (tb, Lp)
    lp = x_tile.shape[1]
    x_rep = jnp.broadcast_to(
        x_tile[:, None, :], (tb, n_quantiles, lp)).reshape(tb * n_quantiles, lp)

    h = (x_rep * qe).astype(mm_dtype)                                      # VPU

    # IQN head, layer 1: Linear -> ReLU.
    h1 = jnp.dot(h, w2_ref[...], preferred_element_type=jnp.float32) + b2_ref[...]
    h1 = jnp.maximum(h1, 0.0).astype(mm_dtype)                             # (TM, Hp)

    # IQN head, layer 2, computed transposed (A @ B^T on the MXU) so the output
    # store is a lane-dense (A8, TM) tile instead of a 128-wide zero-padded one.
    out_t = lax.dot_general(w3t_ref[...], h1, (((1,), (1,)), ((), ())),
                            preferred_element_type=jnp.float32)            # (A8, TM)
    out_ref[...] = out_t + b3t_ref[...]


# ------------------------------- wrapper -----------------------------------

def iqn_forward(x, quantiles, params, dims):
    """x: (B, L) latent; quantiles: (B, Q, 1). Returns ((B, Q, A), quantiles)."""
    pis = params["pis"]
    w1, b1 = params["w1"], params["b1"]
    w2, b2 = params["w2"], params["b2"]
    w3t, b3t = params["w3t"], params["b3t"]
    A = dims["n_actions"]

    Ep, Lp = w1.shape
    Hp = w2.shape[1]
    A8 = w3t.shape[0]

    B = x.shape[0]
    Q = quantiles.shape[1]
    BQ = B * Q

    TB = _choose_tb(B, Q)
    TM = TB * Q
    grid = (pl.cdiv(BQ, TM),)

    ew_dtype = _elementwise_dtype()

    q_flat = quantiles.reshape(BQ, 1).astype(jnp.float32)
    x_pad = _pad2d(x.astype(jnp.float32), B, Lp)           # zero-pad L -> Lp (exact)

    def const(shape):
        return pl.BlockSpec(shape, lambda i: (0, 0))        # stays VMEM-resident

    flops = 2 * BQ * (Ep * Lp + Lp * Hp + Hp * A8)
    bytes_accessed = (q_flat.size * 4 + x_pad.size * 4 + BQ * A8 * 4
                      + sum(int(a.size) * a.dtype.itemsize
                            for a in (pis, w1, b1, w2, b2, w3t, b3t)))
    cost = pl.CostEstimate(flops=int(flops), transcendentals=int(BQ * Ep),
                           bytes_accessed=int(bytes_accessed))

    out_t = pl.pallas_call(
        functools.partial(iqn_kernel, n_quantiles=Q, tb=TB, ew_dtype=ew_dtype),
        out_shape=jax.ShapeDtypeStruct((A8, BQ), jnp.float32),
        grid=grid,
        in_specs=[
            pl.BlockSpec((TM, 1), lambda i: (i, 0)),        # quantiles, row-tiled
            pl.BlockSpec((TB, Lp), lambda i: (i, 0)),       # latent x, batch-tiled
            const((1, Ep)),                                 # pis
            const((Ep, Lp)), const((1, Lp)),                # w1, b1
            const((Lp, Hp)), const((1, Hp)),                # w2, b2
            const((A8, Hp)), const((A8, 1)),                # w3t, b3t
        ],
        out_specs=pl.BlockSpec((A8, TM), lambda i: (0, i)),
        compiler_params=pltpu.CompilerParams(dimension_semantics=("parallel",)),
        cost_estimate=cost,
    )(q_flat, x_pad, pis, w1, b1, w2, b2, w3t, b3t)

    # Tiny (A, BQ) transpose/reshape only — no full padded-array slice pass.
    quantile_values = out_t[:A, :].T.reshape(B, Q, A)
    return quantile_values, quantiles


# ------------------------- deterministic param init -------------------------

def _linear_params(key, fan_in, fan_out, rows_pad, cols_pad, w_dtype):
    # torch.nn.Linear default init: U(-1/sqrt(fan_in), 1/sqrt(fan_in)) for W and b.
    kw, kb = jax.random.split(key)
    bound = 1.0 / np.sqrt(fan_in)
    w = jax.random.uniform(kw, (fan_in, fan_out), jnp.float32, -bound, bound)
    b = jax.random.uniform(kb, (1, fan_out), jnp.float32, -bound, bound)
    w = _pad2d(w, rows_pad, cols_pad).astype(w_dtype)   # zero pad rows/cols -> exact
    b = _pad2d(b, 1, cols_pad)                          # bias stays f32, zero-padded
    return w, b


def make_iqn_params(key, latent_dim, quantile_embed_dim, hidden_dim, n_actions,
                    matmul_dtype=jnp.bfloat16):
    E, L, H, A = quantile_embed_dim, latent_dim, hidden_dim, n_actions
    Ep, Lp, Hp = _round_up(E, _LANE), _round_up(L, _LANE), _round_up(H, _LANE)
    A8 = _round_up(A, _SUBLANE)

    k1, k2, k3 = jax.random.split(key, 3)
    pis = (np.pi * jnp.arange(E, dtype=jnp.float32)).reshape(1, E)
    # Padded pis entries are 0 -> cos() = 1 there, but w1's padded rows are 0, so exact.
    pis = _pad2d(pis, 1, Ep)
    w1, b1 = _linear_params(k1, E, L, Ep, Lp, matmul_dtype)   # quantile embed net
    w2, b2 = _linear_params(k2, L, H, Lp, Hp, matmul_dtype)   # iqn head Linear 1

    # Final layer stored transposed and truncated to the real actions so the kernel's
    # output store is lane-dense; padding to 8 sublanes keeps standard tiling.
    kw, kb = jax.random.split(k3)
    bound = 1.0 / np.sqrt(H)
    w3 = jax.random.uniform(kw, (H, A), jnp.float32, -bound, bound)
    b3 = jax.random.uniform(kb, (1, A), jnp.float32, -bound, bound)
    w3t = _pad2d(w3.T, A8, Hp).astype(matmul_dtype)           # (A8, Hp)
    b3t = _pad2d(b3.T, A8, 1)                                 # (A8, 1) f32

    params = dict(pis=pis, w1=w1, b1=b1, w2=w2, b2=b2, w3t=w3t, b3t=b3t)
    dims = dict(latent_dim=L, quantile_embed_dim=E, hidden_dim=H,
                n_actions=A, n_actions_pad=A8)
    return params, dims


# ----------------------------- pure-JAX reference ---------------------------

def iqn_reference(x, quantiles, params, dims):
    """Same math / same precision choices as the kernel (bf16 MXU inputs, f32 acc)."""
    pis, w1, b1 = params["pis"], params["w1"], params["b1"]
    w2, b2 = params["w2"], params["b2"]
    w3t, b3t = params["w3t"], params["b3t"]
    A = dims["n_actions"]
    mm = w1.dtype
    ew = _elementwise_dtype()
    Lp = w1.shape[1]
    B, Q = quantiles.shape[0], quantiles.shape[1]
    BQ = B * Q

    q_flat = quantiles.reshape(BQ, 1).astype(jnp.float32)
    cos_emb = jnp.cos(q_flat * pis)
    qe = jnp.maximum(jnp.dot(cos_emb.astype(mm), w1,
                             preferred_element_type=jnp.float32) + b1, 0.0).astype(ew)
    x_pad = _pad2d(x.astype(jnp.float32), B, Lp).astype(ew)
    x_rep = jnp.broadcast_to(x_pad[:, None, :], (B, Q, Lp)).reshape(BQ, Lp)
    h = (x_rep * qe).astype(mm)
    h1 = jnp.maximum(jnp.dot(h, w2, preferred_element_type=jnp.float32) + b2,
                     0.0).astype(mm)
    out_t = lax.dot_general(w3t, h1, (((1,), (1,)), ((), ())),
                            preferred_element_type=jnp.float32) + b3t
    return out_t[:A, :].T.reshape(B, Q, A)


# ---------------------------------- main ----------------------------------

if __name__ == "__main__":
    # Small shapes consistent with the module defaults.
    L = 32      # latent_dim
    E = 64      # quantile_embed_dim (module default)
    Q = 8       # n_quantiles (module default)
    H = 128     # hidden width of the iqn_net head (config['fc'] = Linear->ReLU->Linear)
    A = 4       # n_actions

    key = jax.random.PRNGKey(0)
    k_p, k_data = jax.random.split(key)
    params, dims = make_iqn_params(k_p, L, E, H, A)

    fwd = jax.jit(lambda xx, qq: iqn_forward(xx, qq, params, dims))

    # Two batch sizes: tiny (single grid step) and mid-size (multi-step / megacore path).
    for B in (2, 64):
        k_data, k_x, k_q = jax.random.split(k_data, 3)
        x = jax.random.normal(k_x, (B, L), jnp.float32)
        # random_quantiles=True: torch.rand(batch, n_quantiles).unsqueeze(-1)
        # TODO(synk): quantile sampling (torch.rand) is done with jax.random in the wrapper, not in-kernel.
        quantiles = jax.random.uniform(k_q, (B, Q, 1), jnp.float32)

        quantile_values, quantiles_out = fwd(x, quantiles)
        jax.block_until_ready(quantile_values)
        jax.block_until_ready(quantiles_out)

        expect = iqn_reference(x, quantiles, params, dims)
        np.testing.assert_allclose(np.asarray(quantile_values), np.asarray(expect),
                                   rtol=2e-3, atol=2e-3)
        assert quantile_values.shape == (B, Q, A)
        assert quantiles_out.shape == (B, Q, 1)

    print("KERNEL_OK")
</pallas_src>

<mosaic_0001>
module attributes {stable_mosaic.version = 11 : i64} {
  func.func @iqn_kernel(%arg0: i32, %arg1: memref<16x1xf32, #tpu.memory_space<vmem>>, %arg2: memref<2x128xf32, #tpu.memory_space<vmem>>, %arg3: memref<1x128xf32, #tpu.memory_space<vmem>>, %arg4: memref<128x128xbf16, #tpu.memory_space<vmem>>, %arg5: memref<1x128xf32, #tpu.memory_space<vmem>>, %arg6: memref<128x128xbf16, #tpu.memory_space<vmem>>, %arg7: memref<1x128xf32, #tpu.memory_space<vmem>>, %arg8: memref<8x128xbf16, #tpu.memory_space<vmem>>, %arg9: memref<8x1xf32, #tpu.memory_space<vmem>>, %arg10: memref<8x16xf32, #tpu.memory_space<vmem>>) attributes {dimension_semantics = [#tpu.dimension_semantics<parallel>], iteration_bounds = array<i64: 1>, scalar_prefetch = 0 : i64, scratch_operands = 0 : i64, tpu.core_type = #tpu.core_type<tc>, window_params = [{transform_indices = @transform_0, window_bounds = array<i64: 16, 1>}, {transform_indices = @transform_1, window_bounds = array<i64: 2, 128>}, {pipeline_mode = #tpu.pipeline_mode<synchronous>, transform_indices = @transform_2, window_bounds = array<i64: 1, 128>}, {pipeline_mode = #tpu.pipeline_mode<synchronous>, transform_indices = @transform_3, window_bounds = array<i64: 128, 128>}, {pipeline_mode = #tpu.pipeline_mode<synchronous>, transform_indices = @transform_4, window_bounds = array<i64: 1, 128>}, {pipeline_mode = #tpu.pipeline_mode<synchronous>, transform_indices = @transform_5, window_bounds = array<i64: 128, 128>}, {pipeline_mode = #tpu.pipeline_mode<synchronous>, transform_indices = @transform_6, window_bounds = array<i64: 1, 128>}, {pipeline_mode = #tpu.pipeline_mode<synchronous>, transform_indices = @transform_7, window_bounds = array<i64: 8, 128>}, {pipeline_mode = #tpu.pipeline_mode<synchronous>, transform_indices = @transform_8, window_bounds = array<i64: 8, 1>}, {transform_indices = @transform_9, window_bounds = array<i64: 8, 16>}]} {
    %c0 = arith.constant 0 : index
    %c0_0 = arith.constant 0 : index
    %0 = vector.load %arg1[%c0, %c0_0] : memref<16x1xf32, #tpu.memory_space<vmem>>, vector<16x1xf32>
    %c0_1 = arith.constant 0 : index
    %c0_2 = arith.constant 0 : index
    %1 = vector.load %arg3[%c0_1, %c0_2] : memref<1x128xf32, #tpu.memory_space<vmem>>, vector<1x128xf32>
    %2 = vector.broadcast %0 : vector<16x1xf32> to vector<16x128xf32>
    %3 = vector.broadcast %1 : vector<1x128xf32> to vector<16x128xf32>
    %4 = arith.mulf %2, %3 : vector<16x128xf32>
    %5 = math.cos %4 : vector<16x128xf32>
    %6 = arith.truncf %5 : vector<16x128xf32> to vector<16x128xbf16>
    %c0_3 = arith.constant 0 : index
    %c0_4 = arith.constant 0 : index
    %7 = vector.load %arg4[%c0_3, %c0_4] : memref<128x128xbf16, #tpu.memory_space<vmem>>, vector<128x128xbf16>
    %cst = arith.constant dense<0.000000e+00> : vector<16x128xf32>
    %8 = tpu.matmul %6, %7, %cst {dimension_numbers = #tpu.dot_dimension_numbers<[1], [0], [0], [1], [0, 0, 1, 1], [], []>} : vector<16x128xbf16>, vector<128x128xbf16>, vector<16x128xf32> -> vector<16x128xf32>
    %c0_5 = arith.constant 0 : index
    %c0_6 = arith.constant 0 : index
    %9 = vector.load %arg5[%c0_5, %c0_6] : memref<1x128xf32, #tpu.memory_space<vmem>>, vector<1x128xf32>
    %10 = vector.broadcast %9 : vector<1x128xf32> to vector<16x128xf32>
    %11 = arith.addf %8, %10 : vector<16x128xf32>
    %cst_7 = arith.constant 0.000000e+00 : f32
    %12 = vector.broadcast %cst_7 : f32 to vector<16x128xf32>
    %13 = arith.maximumf %11, %12 : vector<16x128xf32>
    %c0_8 = arith.constant 0 : index
    %c0_9 = arith.constant 0 : index
    %14 = vector.load %arg2[%c0_8, %c0_9] : memref<2x128xf32, #tpu.memory_space<vmem>>, vector<2x128xf32>
    %15 = vector.shape_cast %14 : vector<2x128xf32> to vector<2x1x128xf32>
    %16 = vector.shape_cast %15 : vector<2x1x128xf32> to vector<2x1x128xf32>
    %17 = vector.broadcast %16 : vector<2x1x128xf32> to vector<2x8x128xf32>
    %18 = vector.shape_cast %17 : vector<2x8x128xf32> to vector<16x128xf32>
    %19 = arith.mulf %18, %13 : vector<16x128xf32>
    %20 = arith.truncf %19 : vector<16x128xf32> to vector<16x128xbf16>
    %c0_10 = arith.constant 0 : index
    %c0_11 = arith.constant 0 : index
    %21 = vector.load %arg6[%c0_10, %c0_11] : memref<128x128xbf16, #tpu.memory_space<vmem>>, vector<128x128xbf16>
    %cst_12 = arith.constant dense<0.000000e+00> : vector<16x128xf32>
    %22 = tpu.matmul %20, %21, %cst_12 {dimension_numbers = #tpu.dot_dimension_numbers<[1], [0], [0], [1], [0, 0, 1, 1], [], []>} : vector<16x128xbf16>, vector<128x128xbf16>, vector<16x128xf32> -> vector<16x128xf32>
    %c0_13 = arith.constant 0 : index
    %c0_14 = arith.constant 0 : index
    %23 = vector.load %arg7[%c0_13, %c0_14] : memref<1x128xf32, #tpu.memory_space<vmem>>, vector<1x128xf32>
    %24 = vector.broadcast %23 : vector<1x128xf32> to vector<16x128xf32>
    %25 = arith.addf %22, %24 : vector<16x128xf32>
    %cst_15 = arith.constant 0.000000e+00 : f32
    %26 = vector.broadcast %cst_15 : f32 to vector<16x128xf32>
    %27 = arith.maximumf %25, %26 : vector<16x128xf32>
    %28 = arith.truncf %27 : vector<16x128xf32> to vector<16x128xbf16>
    %c0_16 = arith.constant 0 : index
    %c0_17 = arith.constant 0 : index
    %29 = vector.load %arg8[%c0_16, %c0_17] : memref<8x128xbf16, #tpu.memory_space<vmem>>, vector<8x128xbf16>
    %cst_18 = arith.constant dense<0.000000e+00> : vector<8x16xf32>
    %30 = tpu.matmul %29, %28, %cst_18 {dimension_numbers = #tpu.dot_dimension_numbers<[1], [1], [0], [0], [0, 0, 1, 0], [], []>} : vector<8x128xbf16>, vector<16x128xbf16>, vector<8x16xf32> -> vector<8x16xf32>
    %c0_19 = arith.constant 0 : index
    %c0_20 = arith.constant 0 : index
    %31 = vector.load %arg9[%c0_19, %c0_20] : memref<8x1xf32, #tpu.memory_space<vmem>>, vector<8x1xf32>
    %32 = vector.broadcast %31 : vector<8x1xf32> to vector<8x16xf32>
    %33 = arith.addf %30, %32 : vector<8x16xf32>
    %c0_21 = arith.constant 0 : index
    %c0_22 = arith.constant 0 : index
    %34 = vector.load %arg10[%c0_21, %c0_22] : memref<8x16xf32, #tpu.memory_space<vmem>>, vector<8x16xf32>
    tpu.vector_store %arg10[%c0_21, %c0_22], %33 {strides = array<i32>} : memref<8x16xf32, #tpu.memory_space<vmem>>, vector<8x16xf32>,
    return
  }
  func.func @transform_0(%arg0: i32) -> (i32, i32) {
    %c0_i32 = arith.constant 0 : i32
    %c0_i32_0 = arith.constant 0 : i32
    return %arg0, %c0_i32 : i32, i32
  }
  func.func @transform_1(%arg0: i32) -> (i32, i32) {
    %c0_i32 = arith.constant 0 : i32
    %c0_i32_0 = arith.constant 0 : i32
    return %arg0, %c0_i32 : i32, i32
  }
  func.func @transform_2(%arg0: i32) -> (i32, i32) {
    %c0_i32 = arith.constant 0 : i32
    %c0_i32_0 = arith.constant 0 : i32
    %c0_i32_1 = arith.constant 0 : i32
    return %c0_i32, %c0_i32_0 : i32, i32
  }
  func.func @transform_3(%arg0: i32) -> (i32, i32) {
    %c0_i32 = arith.constant 0 : i32
    %c0_i32_0 = arith.constant 0 : i32
    %c0_i32_1 = arith.constant 0 : i32
    return %c0_i32, %c0_i32_0 : i32, i32
  }
  func.func @transform_4(%arg0: i32) -> (i32, i32) {
    %c0_i32 = arith.constant 0 : i32
    %c0_i32_0 = arith.constant 0 : i32
    %c0_i32_1 = arith.constant 0 : i32
    return %c0_i32, %c0_i32_0 : i32, i32
  }
  func.func @transform_5(%arg0: i32) -> (i32, i32) {
    %c0_i32 = arith.constant 0 : i32
    %c0_i32_0 = arith.constant 0 : i32
    %c0_i32_1 = arith.constant 0 : i32
    return %c0_i32, %c0_i32_0 : i32, i32
  }
  func.func @transform_6(%arg0: i32) -> (i32, i32) {
    %c0_i32 = arith.constant 0 : i32
    %c0_i32_0 = arith.constant 0 : i32
    %c0_i32_1 = arith.constant 0 : i32
    return %c0_i32, %c0_i32_0 : i32, i32
  }
  func.func @transform_7(%arg0: i32) -> (i32, i32) {
    %c0_i32 = arith.constant 0 : i32
    %c0_i32_0 = arith.constant 0 : i32
    %c0_i32_1 = arith.constant 0 : i32
    return %c0_i32, %c0_i32_0 : i32, i32
  }
  func.func @transform_8(%arg0: i32) -> (i32, i32) {
    %c0_i32 = arith.constant 0 : i32
    %c0_i32_0 = arith.constant 0 : i32
    %c0_i32_1 = arith.constant 0 : i32
    return %c0_i32, %c0_i32_0 : i32, i32
  }
  func.func @transform_9(%arg0: i32) -> (i32, i32) {
    %c0_i32 = arith.constant 0 : i32
    %c0_i32_0 = arith.constant 0 : i32
    return %c0_i32, %arg0 : i32, i32
  }
}

</mosaic_0001>

<bundles_post_ra>
// kernel: _lambda_.1
= control target key start
LH: loop header
LB: loop body
LE: loop exit
PB: predicated region body
PF: predicated region fallthrough
CT: control target
= control target key end

     0   :  { %14 = vsyncpa [#allocation3], 0  ;;  %s1029_s0 = inlined_call_operand.vmem [shape: f32[16,1], index: 0, kind: input, shape index: {}]   ;;  %s1030_s1 = inlined_call_operand.vmem [shape: f32[2,128], index: 1, kind: input, shape index: {}]   ;;  %s1031_s2 = inlined_call_operand.vmem [shape: f32[1,128], index: 2, kind: input, shape index: {}]   ;;  %s1032_s3 = inlined_call_operand.hbm [shape: bf16[128,128], index: 3, kind: input, shape index: {}]   ;;  %s1033_s4 = inlined_call_operand.vmem [shape: f32[1,128], index: 4, kind: input, shape index: {}]   ;;  %s1034_s5 = inlined_call_operand.hbm [shape: bf16[128,128], index: 5, kind: input, shape index: {}]   ;;  %s1035_s6 = inlined_call_operand.vmem [shape: f32[1,128], index: 6, kind: input, shape index: {}]   ;;  %s1036_s7 = inlined_call_operand.vmem [shape: bf16[8,128], index: 7, kind: input, shape index: {}]   ;;  %s1037_s8 = inlined_call_operand.vmem [shape: f32[8,1], index: 8, kind: input, shape index: {}]   ;;  %s1038_s9 = inlined_call_operand.vmem [shape: f32[8,16], index: 9, kind: output, shape index: {}]  }
   0x1   :  { %s26_s11 = sshll.u32 %s1032_s3, 4  ;;  %s27_s11 = int_to_ptr.hbm [resolvable:$true] %s26_s11 }
   0x2   :  { %15 = vsyncpa [#allocation5], 0  ;;  %s753_s12 = smov [#allocation2]   ;;  %s41_s16 = sshll.u32 %s1034_s5, 4  ;;  %s42_s16 = int_to_ptr.hbm [resolvable:$true] %s41_s16 }
   0x3   :  { %s28_s13 = sshll.u32 %s753_s12, 4  ;;  %s754_s17 = smov 64   ;;  %s29_s13 = int_to_ptr.vmem [resolvable:$true] %s28_s13 }
   0x4   :  { %s755_s18 = smov 4   ;;  %s756_s19 = smov [#allocation4]  }
   0x5   :  { %34 = dma.hbm_to_vmem [thread:$0]  %s27_s11, 1024, %s29_s13, [#allocation3], %s754_s17, %s754_s17, %s755_s18  }
   0x6   :  { %s43_s20 = sshll.u32 %s756_s19, 4  ;;  %s44_s20 = int_to_ptr.vmem [resolvable:$true] %s43_s20 }
   0x7   :  { %49 = dma.hbm_to_vmem [thread:$0]  %s42_s16, 1024, %s44_s20, [#allocation5], %s754_s17, %s754_s17, %s755_s18  }
   0x8   :  { %749 = dma.done.wait [#allocation3], 1024  }
   0x9   :  { %750 = vsyncadd [#allocation3], 4294966272 }
   0xa   :  { %751 = dma.done.wait [#allocation5], 1024  }
   0xb   :  { %752 = vsyncadd [#allocation5], 4294966272  ;;  %v757_v0 = vmov 0   ;;  %v65_v1 = vld [vmem:[%s1029_s0] sm:$0xff]  ;;  %v66_v2 = vld [vmem:[%s1029_s0 + $0x8] sm:$0xff] }
   0xc   :  { %696 = vset.pattern.permute.xlu0 %v757_v0  ;;  %697 = vset.pattern.permute.xlu1 %v757_v0  ;;  %v698_v3 = vld [vmem:[%s1031_s2] ss:$0 sm:$0xff]  ;;  %v676_v6 = vld [vmem:[#allocation2 + $0x38] sm:$0xff]  ;;  %v675_v8 = vld [vmem:[#allocation2 + $0x30] sm:$0xff]  ;;  %v758_v27 = vmov 683565275  }
   0xd   :  { %70 = vperm.xlu0 %696, %v65_v1   ;;  %460 = vmatpush.bf16.msra.mxu0 %v676_v6  ;;  %v674_v13 = vld [vmem:[#allocation2 + $0x28] sm:$0xff]  ;;  %v673_v20 = vld [vmem:[#allocation2 + $0x20] sm:$0xff]  ;;  %v759_v29 = vmov 2475754826   ;;  %v760_v31 = vmov 2131351028  }
   0xe   :  { %v761_v33 = vmov 2102212464   ;;  %v672_v35 = vld [vmem:[#allocation2 + $0x18] sm:$0xff]  ;;  %v762_v39 = vmov 920167782   ;;  %v671_v53 = vld [vmem:[#allocation2 + $0x10] sm:$0xff] }
   0xf   :  { %v763_v42 = vmov 1326507024   ;;  %v670_v1 = vld [vmem:[#allocation2 + $0x8] sm:$0xff] }
  0x11   :  { %461 = vmatpush.bf16.msra.mxu0 %v675_v8 }
  0x15   :  { %75 = vperm.xlu0 %696, %v66_v2   ;;  %462 = vmatpush.bf16.msra.mxu0 %v674_v13 }
  0x19   :  { %463 = vmatpush.bf16.msra.mxu0 %v673_v20 }
  0x1d   :  { %464 = vmatpush.bf16.msra.mxu0 %v672_v35 }
  0x21   :  { %465 = vmatpush.bf16.msra.mxu0 %v671_v53 }
  0x25   :  { %466 = vmatpush.bf16.msra.mxu0 %v670_v1 }
  0x7f   :  { %v71_v4 = vpop.permute.xlu0 %70 }
  0x80   :  { %v831_v5 = vmul.f32 %v698_v3, %v71_v4 }
  0x82   :  { %v86_v7 = vand.u32 2139095040, %v831_v5  ;;  %v83_v10 = vand.u32 2147483647, %v831_v5 }
  0x84   :  { %v87_v9 = vshrl.u32 %v86_v7, 23  ;;  %v90_v16 = vand.u32 8388607, %v83_v10 }
  0x86   :  { %v599_v11 = vadd.s32 4294967169, %v87_v9  ;;  %v91_v24 = vor.u32 8388608, %v90_v16 }
  0x87   :  { %v76_v12 = vpop.permute.xlu0 %75 }
  0x88   :  { %v93_v14 = vadd.s32 1, %v599_v11  ;;  %v835_v15 = vmul.f32 %v698_v3, %v76_v12  ;;  %v847_v51 = vshll.u32 %v91_v24, 8 }
  0x8a   :  { %vm94_vm0 = vcmp.gt.s32.totalorder %v93_v14, 0  ;;  %v237_v17 = vand.u32 2147483647, %v835_v15  ;;  %v240_v19 = vand.u32 2139095040, %v835_v15  ;;  %v132_v62 = vand.u32 65535, %v847_v51 }
  0x8b   :  { %v95_v18 = vsel %vm94_vm0, %v93_v14, 0  ;;  %v133_v2 = vshrl.u32 %v847_v51, 16 }
  0x8c   :  { %v97_v21 = vand.u32 31, %v95_v18  ;;  %v241_v22 = vshrl.u32 %v240_v19, 23  ;;  %v244_v23 = vand.u32 8388607, %v237_v17  ;;  %v843_v25 = vshrl.u32 %v95_v18, 5 }
  0x8e   :  { %v98_v26 = vsub.s32 32, %v97_v21  ;;  %v100_v28 = vshll.u32 %v758_v27, %v97_v21  ;;  %v103_v30 = vshll.u32 %v759_v29, %v97_v21  ;;  %v106_v32 = vshll.u32 %v760_v31, %v97_v21 }
  0x8f   :  { %v109_v34 = vshll.u32 %v761_v33, %v97_v21  ;;  %v112_v41 = vshll.u32 %v762_v39, %v97_v21  ;;  %v602_v44 = vadd.s32 4294967169, %v241_v22  ;;  %v245_v45 = vor.u32 8388608, %v244_v23  ;;  %v669_v21 = vld [vmem:[#allocation2] sm:$0xff] }
  0x90   :  { %v101_v36 = vshrl.u32 %v759_v29, %v98_v26  ;;  %v104_v37 = vshrl.u32 %v760_v31, %v98_v26  ;;  %v107_v38 = vshrl.u32 %v761_v33, %v98_v26  ;;  %v110_v40 = vshrl.u32 %v762_v39, %v98_v26  ;;  %467 = vmatpush.bf16.msra.mxu0 %v669_v21 }
  0x91   :  { %v113_v43 = vshrl.u32 %v763_v42, %v98_v26  ;;  %vm118_vm1 = vcmp.lt.s32.totalorder %v843_v25, 4  ;;  %v247_v52 = vadd.s32 1, %v602_v44  ;;  %vm115_vm2 = vcmp.lt.s32.totalorder %v843_v25, 1 }
  0x92   :  { %v102_v46 = vor.u32 %v101_v36, %v100_v28  ;;  %v105_v47 = vor.u32 %v104_v37, %v103_v30  ;;  %v108_v48 = vor.u32 %v107_v38, %v106_v32  ;;  %v111_v49 = vor.u32 %v110_v40, %v109_v34 }
  0x93   :  { %v114_v50 = vor.u32 %v113_v43, %v112_v41  ;;  %v852_v55 = vshll.u32 %v245_v45, 8  ;;  %vm117_vm3 = vcmp.lt.s32.totalorder %v843_v25, 3  ;;  %vm248_vm4 = vcmp.gt.s32.totalorder %v247_v52, 0 }
  0x94   :  { %v124_v54 = vsel %vm118_vm1, %v111_v49, 920167782  ;;  %v123_v56 = vsel %vm115_vm2, %v102_v46, %v105_v47  ;;  %v127_v59 = vsel %vm115_vm2, %v105_v47, %v108_v48  ;;  %v249_v61 = vsel %vm248_vm4, %v247_v52, 0 }
  0x95   :  { %v128_v57 = vsel %vm118_vm1, %v114_v50, 1326507024  ;;  %v125_v58 = vsel %vm117_vm3, %v108_v48, %v124_v54  ;;  %v251_v63 = vand.u32 31, %v249_v61  ;;  %v868_v3 = vand.u32 65535, %v852_v55 }
  0x96   :  { %v129_v60 = vsel %vm117_vm3, %v111_v49, %v128_v57  ;;  %v99_v4 = vshrl.u32 %v758_v27, %v98_v26  ;;  %vm116_vm5 = vcmp.lt.s32.totalorder %v843_v25, 2  ;;  %v872_v6 = vshrl.u32 %v249_v61, 5 }
  0x97   :  { %v874_v7 = vsub.s32 32, %v251_v63  ;;  %v126_v8 = vsel %vm116_vm5, %v123_v56, %v125_v58  ;;  %v130_v9 = vsel %vm116_vm5, %v127_v59, %v129_v60  ;;  %v254_v11 = vshll.u32 %v758_v27, %v251_v63 }
  0x98   :  { %v257_v12 = vshll.u32 %v759_v29, %v251_v63  ;;  %v263_v13 = vshll.u32 %v761_v33, %v251_v63  ;;  %v120_v14 = vsel %vm118_vm1, %v108_v48, 2102212464  ;;  %v260_v22 = vshll.u32 %v760_v31, %v251_v63 }
  0x99   :  { %v255_v16 = vshrl.u32 %v759_v29, %v874_v7  ;;  %v258_v18 = vshrl.u32 %v760_v31, %v874_v7  ;;  %v261_v19 = vshrl.u32 %v761_v33, %v874_v7  ;;  %v264_v20 = vshrl.u32 %v762_v39, %v874_v7 }
  0x9a   :  { %v267_v23 = vshrl.u32 %v763_v42, %v874_v7  ;;  %v134_v24 = vand.u32 65535, %v130_v9  ;;  %v157_v26 = vshrl.u32 %v126_v8, 16  ;;  %v266_v34 = vshll.u32 %v762_v39, %v251_v63 }
  0x9b   :  { %v888_v28 = vor.u32 %v255_v16, %v254_v11  ;;  %v890_v30 = vor.u32 %v258_v18, %v257_v12  ;;  %v265_v32 = vor.u32 %v264_v20, %v263_v13  ;;  %v892_v29 = vor.u32 %v261_v19, %v260_v22 }
  0x9c   :  { %v895_v35 = vshrl.u32 %v852_v55, 16  ;;  %v135_v33 = vshrl.u32 %v130_v9, 16  ;;  %v156_v36 = vand.u32 65535, %v126_v8  ;;  %v268_v37 = vor.u32 %v267_v23, %v266_v34 }
  0x9d   :  { %vm272_vm6 = vcmp.lt.s32.totalorder %v872_v6, 4  ;;  %v119_v31 = vsel %vm115_vm2, %v99_v4, %v102_v46  ;;  %v121_v38 = vsel %vm117_vm3, %v105_v47, %v120_v14  ;;  %vm269_vm7 = vcmp.lt.s32.totalorder %v872_v6, 1 }
  0x9e   :  { %v278_v39 = vsel %vm272_vm6, %v265_v32, 920167782  ;;  %v137_v40 = vmul.u32 %v135_v33, %v132_v62  ;;  %v138_v41 = vmul.u32 %v134_v24, %v133_v2  ;;  %vm271_vm8 = vcmp.lt.s32.totalorder %v872_v6, 3 }
  0x9f   :  { %v277_v42 = vsel %vm269_vm7, %v888_v28, %v890_v30  ;;  %v136_v43 = vmul.u32 %v134_v24, %v132_v62  ;;  %v159_v44 = vmul.u32 %v157_v26, %v132_v62  ;;  %v281_v45 = vsel %vm269_vm7, %v890_v30, %v892_v29 }
  0xa0   :  { %v140_v46 = vshll.u32 %v137_v40, 16  ;;  %v158_v47 = vmul.u32 %v156_v36, %v132_v62  ;;  %v160_v48 = vmul.u32 %v156_v36, %v133_v2  ;;  %v279_v49 = vsel %vm271_vm8, %v892_v29, %v278_v39 }
  0xa1   :  { %v282_v50 = vsel %vm272_vm6, %v268_v37, 1326507024  ;;  %v139_v52 = vmul.u32 %v135_v33, %v133_v2  ;;  %v162_v53 = vshll.u32 %v159_v44, 16  ;;  %v142_v54 = vshll.u32 %v138_v41, 16 }
  0xa2   :  { %vm144_vm9 = vc.u32 %v136_v43, %v140_v46  ;;  %v146_v56 = vadd.s32 %v140_v46, %v136_v43  ;;  %v161_v57 = vmul.u32 %v157_v26, %v133_v2  ;;  %v164_v59 = vshll.u32 %v160_v48, 16 }
  0xa3   :  { %v145_v58 = vsel %vm144_vm9, 1, %v757_v0  ;;  %vm166_vm10 = vc.u32 %v158_v47, %v162_v53  ;;  %v168_v60 = vadd.s32 %v162_v53, %v158_v47  ;;  %v283_v61 = vsel %vm271_vm8, %v265_v32, %v282_v50 }
  0xa4   :  { %v147_v62 = vadd.s32 %v145_v58, %v139_v52  ;;  %vm148_vm11 = vc.u32 %v146_v56, %v142_v54  ;;  %v167_v63 = vsel %vm166_vm10, 1, %v757_v0  ;;  %vm270_vm13 = vcmp.lt.s32.totalorder %v872_v6, 2 }
  0xa5   :  { %v149_v1 = vsel %vm148_vm11, 1, %v757_v0  ;;  %v169_v4 = vadd.s32 %v167_v63, %v161_v57  ;;  %vm170_vm12 = vc.u32 %v168_v60, %v164_v59  ;;  %v141_v8 = vshrl.u32 %v137_v40, 16 }
  0xa6   :  { %v151_v2 = vadd.s32 %v149_v1, %v147_v62  ;;  %v171_v9 = vsel %vm170_vm12, 1, %v757_v0  ;;  %v280_v11 = vsel %vm270_vm13, %v277_v42, %v279_v49  ;;  %v122_v12 = vsel %vm116_vm5, %v119_v31, %v121_v38 }
  0xa7   :  { %v163_v13 = vshrl.u32 %v159_v44, 16  ;;  %v173_v14 = vadd.s32 %v171_v9, %v169_v4  ;;  %v284_v16 = vsel %vm270_vm13, %v281_v45, %v283_v61  ;;  %v143_v18 = vshrl.u32 %v138_v41, 16 }
  0xa8   :  { %v152_v19 = vadd.s32 %v151_v2, %v141_v8  ;;  %v288_v20 = vand.u32 65535, %v284_v16  ;;  %v289_v21 = vshrl.u32 %v284_v16, 16  ;;  %v165_v22 = vshrl.u32 %v160_v48, 16 }
  0xa9   :  { %v174_v23 = vadd.s32 %v173_v14, %v163_v13  ;;  %v310_v24 = vand.u32 65535, %v280_v11  ;;  %v311_v26 = vshrl.u32 %v280_v11, 16  ;;  %v934_v34 = vadd.s32 %v168_v60, %v164_v59 }
  0xaa   :  { %v932_v32 = vadd.s32 %v152_v19, %v143_v18  ;;  %v291_v25 = vmul.u32 %v289_v21, %v868_v3  ;;  %v292_v33 = vmul.u32 %v288_v20, %v895_v35  ;;  %v176_v31 = vmul.u32 %v847_v51, %v122_v12 }
  0xab   :  { %v175_v36 = vadd.s32 %v174_v23, %v165_v22  ;;  %v313_v37 = vmul.u32 %v311_v26, %v868_v3  ;;  %v290_v38 = vmul.u32 %v288_v20, %v868_v3  ;;  %v312_v41 = vmul.u32 %v310_v24, %v868_v3 }
  0xac   :  { %vm178_vm14 = vc.u32 %v932_v32, %v934_v34  ;;  %v294_v39 = vshll.u32 %v291_v25, 16  ;;  %v314_v42 = vmul.u32 %v310_v24, %v895_v35  ;;  %v293_v44 = vmul.u32 %v289_v21, %v895_v35 }
  0xad   :  { %v179_v40 = vadd.s32 1, %v175_v36  ;;  %v316_v43 = vshll.u32 %v313_v37, 16  ;;  %v296_v45 = vshll.u32 %v292_v33, 16  ;;  %v315_v48 = vmul.u32 %v311_v26, %v895_v35 }
  0xae   :  { %vm298_vm15 = vc.u32 %v290_v38, %v294_v39  ;;  %v300_v46 = vadd.s32 %v294_v39, %v290_v38  ;;  %v318_v53 = vshll.u32 %v314_v42, 16  ;;  %v295_v58 = vshrl.u32 %v291_v25, 16 }
  0xaf   :  { %v180_v47 = vsel %vm178_vm14, %v179_v40, %v175_v36  ;;  %v299_v51 = vsel %vm298_vm15, 1, %v757_v0  ;;  %vm320_vm0 = vc.u32 %v312_v41, %v316_v43  ;;  %v322_v54 = vadd.s32 %v316_v43, %v312_v41 }
  0xb0   :  { %v181_v49 = vadd.s32 %v180_v47, %v176_v31  ;;  %v301_v50 = vadd.s32 %v299_v51, %v293_v44  ;;  %vm302_vm1 = vc.u32 %v300_v46, %v296_v45  ;;  %v321_v52 = vsel %vm320_vm0, 1, %v757_v0 }
  0xb1   :  { %v303_v3 = vsel %vm302_vm1, 1, %v757_v0  ;;  %v323_v56 = vadd.s32 %v321_v52, %v315_v48  ;;  %v253_v60 = vshrl.u32 %v758_v27, %v874_v7  ;;  %v274_v35 = vsel %vm272_vm6, %v892_v29, 2102212464 }
  0xb2   :  { %v182_v57 = vadd.s32 536870912, %v181_v49  ;;  %v305_v59 = vadd.s32 %v303_v3, %v301_v50  ;;  %vm324_vm2 = vc.u32 %v322_v54, %v318_v53  ;;  %v297_v62 = vshrl.u32 %v292_v33, 16 }
  0xb3   :  { %v325_v1 = vsel %vm324_vm2, 1, %v757_v0  ;;  %v317_v4 = vshrl.u32 %v313_v37, 16  ;;  %v273_v9 = vsel %vm269_vm7, %v253_v60, %v888_v28  ;;  %v275_v27 = vsel %vm271_vm8, %v890_v30, %v274_v35 }
  0xb4   :  { %v955_v61 = vshrl.u32 %v182_v57, 30  ;;  %v306_v63 = vadd.s32 %v305_v59, %v295_v58  ;;  %v327_v8 = vadd.s32 %v325_v1, %v323_v56  ;;  %v319_v29 = vshrl.u32 %v314_v42, 16  ;;  %v684_v1 = vld [vmem:[#allocation4 + $0x38] sm:$0xff] }
  0xb5   :  { %v326_v13 = vadd.s32 %v322_v54, %v318_v53  ;;  %v276_v0 = vsel %vm270_vm13, %v273_v9, %v275_v27  ;;  %v177_v6 = vadd.s32 %v934_v34, %v932_v32  ;;  %vm85_vm8 = vcmp.lt.s32.totalorder %v831_v5, 0  ;;  %554 = vmatpush.bf16.msra.mxu1 %v684_v1  ;;  %v683_v27 = vld [vmem:[#allocation4 + $0x30] sm:$0xff] }
  0xb6   :  { %v184_v2 = vshll.u32 %v955_v61, 30  ;;  %v307_v7 = vadd.s32 %v306_v63, %v297_v62  ;;  %v328_v11 = vadd.s32 %v327_v8, %v317_v4  ;;  %v330_v28 = vmul.u32 %v852_v55, %v276_v0 }
  0xb7   :  { %vm976_vm9 = vcmp.le.f32.partialorder %v83_v10, 0.7853982  ;;  %vm239_vm10 = vcmp.lt.s32.totalorder %v835_v15, 0  ;;  %vm988_vm11 = vcmp.le.f32.partialorder %v237_v17, 0.7853982  ;;  %vm226_vm2 = vweird.f32 %v831_v5 }
  0xb8   :  { %v185_v12 = vsub.s32 %v181_v49, %v184_v2  ;;  %v329_v14 = vadd.s32 %v328_v11, %v319_v29  ;;  %vm332_vm4 = vc.u32 %v307_v7, %v326_v13  ;;  %v331_v50 = vadd.s32 %v326_v13, %v307_v7  ;;  %v682_v13 = vld [vmem:[#allocation4 + $0x28] sm:$0xff] }
  0xb9   :  { %555 = vmatpush.bf16.msra.mxu1 %v683_v27 }
  0xba   :  { %vm186_vm3 = vcmp.lt.s32.totalorder %v185_v12, 0  ;;  %v187_v16 = vsub.s32 0, %v185_v12  ;;  %v333_v18 = vadd.s32 1, %v329_v14 }
  0xbc   :  { %v188_v19 = vsel %vm186_vm3, %v187_v16, %v185_v12  ;;  %v334_v21 = vsel %vm332_vm4, %v333_v18, %v329_v14  ;;  %v207_v18 = vsub.s32 4, %v955_v61  ;;  %vm380_vm3 = vweird.f32 %v835_v15  ;;  %v700_v14 = vld [vmem:[%s1035_s6] ss:$0 sm:$0xff] }
  0xbd   :  { %v189_v20 = vclz %v188_v19  ;;  %v335_v22 = vadd.s32 %v334_v21, %v330_v28  ;;  %556 = vmatpush.bf16.msra.mxu1 %v682_v13  ;;  %v681_v21 = vld [vmem:[#allocation4 + $0x20] sm:$0xff]  ;;  %vm591_vm4 = vcmask 130048  }
  0xbe   :  { %v208_v17 = vsel %vm85_vm8, %v207_v18, %v955_v61  ;;  %v572_v13 = vld [vmem:[%s1037_s8] sm:$0xff] }
  0xbf   :  { %v600_v30 = vadd.s32 4294967294, %v189_v20  ;;  %v336_v23 = vadd.s32 536870912, %v335_v22  ;;  %575 = vperm.xlu1 %697, %v572_v13  }
  0xc1   :  { %vm601_vm5 = vcmp.lt.s32.totalorder %v600_v30, 0  ;;  %v968_v26 = vshrl.u32 %v336_v23, 30  ;;  %557 = vmatpush.bf16.msra.mxu1 %v681_v21 }
  0xc2   :  { %v192_v24 = vsel %vm601_vm5, 0, %v600_v30 }
  0xc3   :  { %v193_v25 = vsub.s32 32, %v192_v24  ;;  %v197_v33 = vsub.s32 4294967266, %v192_v24  ;;  %v338_v36 = vshll.u32 %v968_v26, 30  ;;  %v194_v37 = vshll.u32 %v185_v12, %v192_v24 }
  0xc4   :  { %v361_v24 = vsub.s32 4, %v968_v26 }
  0xc5   :  { %v195_v31 = vshrl.u32 %v177_v6, %v193_v25  ;;  %v198_v38 = vadd.s32 127, %v197_v33  ;;  %v339_v55 = vsub.s32 %v335_v22, %v338_v36  ;;  %v210_v36 = vsel %vm976_vm9, 0, %v208_v17 }
  0xc6   :  { %v227_v61 = vand.u32 3, %v210_v36 }
  0xc7   :  { %v196_v39 = vor.u32 %v195_v31, %v194_v37  ;;  %v199_v40 = vshll.u32 %v198_v38, 23  ;;  %vm340_vm6 = vcmp.lt.s32.totalorder %v339_v55, 0  ;;  %v341_v41 = vsub.s32 0, %v339_v55 }
  0xc8   :  { %vm229_vm12 = vcmp.eq.s32.totalorder %v227_v61, 0  ;;  %vm232_vm13 = vcmp.eq.s32.totalorder %v227_v61, 2  ;;  %vm228_vm14 = vcmp.lt.s32.totalorder %v227_v61, 2 }
  0xc9   :  { %v200_v42 = vor.u32 4788187, %v199_v40  ;;  %v342_v43 = vsel %vm340_vm6, %v341_v41, %v339_v55  ;;  %v203_v45 = vcvt.s32.f32 %v196_v39 }
  0xca   :  { %v343_v46 = vclz %v342_v43 }
  0xcb   :  { %v201_v44 = vand.u32 2147483647, %v200_v42 }
  0xcc   :  { %v603_v51 = vadd.s32 4294967294, %v343_v46 }
  0xcd   :  { %v204_v47 = vmul.f32 %v203_v45, %v201_v44 }
  0xce   :  { %vm604_vm7 = vcmp.lt.s32.totalorder %v603_v51, 0 }
  0xcf   :  { %v205_v32 = vxor.u32 2147483648, %v204_v47  ;;  %v346_v48 = vsel %vm604_vm7, 0, %v603_v51 }
  0xd0   :  { %v347_v52 = vsub.s32 32, %v346_v48  ;;  %v351_v3 = vsub.s32 4294967266, %v346_v48  ;;  %v348_v56 = vshll.u32 %v339_v55, %v346_v48  ;;  %v362_v55 = vsel %vm239_vm10, %v361_v24, %v968_v26 }
  0xd1   :  { %v206_v49 = vsel %vm85_vm8, %v205_v32, %v204_v47  ;;  %v364_v43 = vsel %vm988_vm11, 0, %v362_v55 }
  0xd2   :  { %v209_v53 = vsel %vm976_vm9, %v831_v5, %v206_v49  ;;  %v349_v57 = vshrl.u32 %v331_v50, %v347_v52  ;;  %v352_v58 = vadd.s32 127, %v351_v3  ;;  %v381_v32 = vand.u32 3, %v364_v43  ;;  %v699_v5 = vld [vmem:[%s1033_s4] ss:$0 sm:$0xff] }
  0xd3   :  { %v211_v54 = vmul.f32 %v209_v53, %v209_v53 }
  0xd4   :  { %v350_v60 = vor.u32 %v349_v57, %v348_v56  ;;  %v353_v35 = vshll.u32 %v352_v58, 23  ;;  %vm383_vm15 = vcmp.eq.s32.totalorder %v381_v32, 0  ;;  %vm386_vm0 = vcmp.eq.s32.totalorder %v381_v32, 2 }
  0xd5   :  { %v212_v59 = vmul.f32 -0.001358992, %v211_v54  ;;  %v219_v10 = vmul.f32 -0.00019511016, %v211_v54  ;;  %vm382_vm1 = vcmp.lt.s32.totalorder %v381_v32, 2 }
  0xd6   :  { %v354_v63 = vor.u32 4788187, %v353_v35  ;;  %v357_v9 = vcvt.s32.f32 %v350_v60  ;;  %v678_v60 = vld [vmem:[#allocation4 + $0x8] sm:$0xff]  ;;  %v677_v35 = vld [vmem:[#allocation4] sm:$0xff] }
  0xd7   :  { %v220_v62 = vadd.f32 0.008332121, %v219_v10  ;;  %v213_v4 = vadd.f32 0.041655596, %v212_v59  ;;  %v680_v59 = vld [vmem:[#allocation4 + $0x18] sm:$0xff]  ;;  %v679_v10 = vld [vmem:[#allocation4 + $0x10] sm:$0xff] }
  0xd8   :  { %v355_v2 = vand.u32 2147483647, %v354_v63  ;;  %558 = vmatpush.bf16.msra.mxu1 %v680_v59 }
  0xd9   :  { %v221_v8 = vmul.f32 %v220_v62, %v211_v54  ;;  %v214_v11 = vmul.f32 %v213_v4, %v211_v54 }
  0xda   :  { %v358_v29 = vmul.f32 %v357_v9, %v355_v2 }
  0xdb   :  { %v222_v7 = vadd.f32 -0.16666654, %v221_v8  ;;  %v215_v28 = vadd.f32 -0.4999988, %v214_v11 }
  0xdc   :  { %v359_v12 = vxor.u32 2147483648, %v358_v29  ;;  %559 = vmatpush.bf16.msra.mxu1 %v679_v10 }
  0xdd   :  { %v223_v0 = vmul.f32 %v222_v7, %v211_v54  ;;  %v216_v6 = vmul.f32 %v215_v28, %v211_v54 }
  0xde   :  { %v360_v16 = vsel %vm239_vm10, %v359_v12, %v358_v29 }
  0xdf   :  { %v363_v19 = vsel %vm988_vm11, %v835_v15, %v360_v16  ;;  %v224_v22 = vadd.f32 1.0, %v223_v0  ;;  %v217_v39 = vadd.f32 1.0, %v216_v6  ;;  %v476_v15 = vld [vmem:[%s1030_s1] sm:$0x3] }
  0xe0   :  { %v365_v20 = vmul.f32 %v363_v19, %v363_v19  ;;  %560 = vmatpush.bf16.msra.mxu1 %v678_v60  ;;  %v478_v1 = vrot.slane %v476_v15, 1  ;;  %v479_v2 = vperm.slane %v476_v15, 0 }
  0xe1   :  { %v225_v37 = vmul.f32 %v224_v22, %v209_v53  ;;  %v233_v46 = vxor.u32 2147483648, %v217_v39  ;;  %v571_v22 = vld [vmem:[%s1036_s7] sm:$0xf] }
  0xe2   :  { %v366_v30 = vmul.f32 -0.001358992, %v365_v20  ;;  %v373_v23 = vmul.f32 -0.00019511016, %v365_v20  ;;  %v480_v27 = vperm.slane %v478_v1, 0 }
  0xe3   :  { %v230_v42 = vxor.u32 2147483648, %v225_v37  ;;  %v234_v26 = vsel %vm232_vm13, %v233_v46, %v225_v37 }
  0xe4   :  { %v367_v25 = vadd.f32 0.041655596, %v366_v30  ;;  %v374_v33 = vadd.f32 0.008332121, %v373_v23  ;;  %561 = vmatpush.bf16.msra.mxu1 %v677_v35 }
  0xe5   :  { %v231_v34 = vsel %vm229_vm12, %v217_v39, %v230_v42 }
  0xe6   :  { %v368_v31 = vmul.f32 %v367_v25, %v365_v20  ;;  %v375_v38 = vmul.f32 %v374_v33, %v365_v20  ;;  %v235_v52 = vsel %vm228_vm14, %v231_v34, %v234_v26 }
  0xe7   :  { %v236_v56 = vsel %vm226_vm2, nan, %v235_v52 }
  0xe8   :  { %v369_v40 = vadd.f32 -0.4999988, %v368_v31  ;;  %v376_v41 = vadd.f32 -0.16666654, %v375_v38 }
  0xea   :  { %v370_v44 = vmul.f32 %v369_v40, %v365_v20  ;;  %v377_v45 = vmul.f32 %v376_v41, %v365_v20 }
  0xec   :  { %v371_v47 = vadd.f32 1.0, %v370_v44  ;;  %v378_v51 = vadd.f32 1.0, %v377_v45 }
  0xee   :  { %v379_v48 = vmul.f32 %v378_v51, %v363_v19  ;;  %v387_v49 = vxor.u32 2147483648, %v371_v47 }
  0xf0   :  { %v384_v50 = vxor.u32 2147483648, %v379_v48  ;;  %v388_v53 = vsel %vm386_vm0, %v387_v49, %v379_v48 }
  0xf2   :  { %v385_v3 = vsel %vm383_vm15, %v371_v47, %v384_v50 }
  0xf3   :  { %v389_v54 = vsel %vm382_vm1, %v385_v3, %v388_v53 }
  0xf4   :  { %v390_v57 = vsel %vm380_vm3, nan, %v389_v54 }
  0xf5   :  { %v391_v58 = vpack.c.bf16 %v390_v57, %v236_v56 }
  0xf7   :  { %468 = vmatmul.bf16.vlgmr.msra.gmra.mxu0 %v391_v58 }
 0x131   :  { %v576_v30 = vpop.permute.xlu1 %575 }
 0x174   :  { %v469_v62 = vpop.f32.mrf.mxu0 }
 0x175   :  { %v470_v63 = vadd.f32 %v699_v5, %v469_v62 }
 0x177   :  { %v474_v8 = vmax.f32 %v470_v63, 0.0 }
 0x179   :  { %v483_v29 = vmul.f32 %v479_v2, %v474_v8 }
 0x17c   :  { %v471_v4 = vpop.f32.mrf.mxu0 }
 0x17d   :  { %v472_v9 = vadd.f32 %v699_v5, %v471_v4 }
 0x17f   :  { %v475_v7 = vmax.f32 %v472_v9, 0.0 }
 0x181   :  { %v484_v11 = vmul.f32 %v480_v27, %v475_v7 }
 0x183   :  { %v485_v12 = vpack.c.bf16 %v484_v11, %v483_v29 }
 0x185   :  { %562 = vmatmul.bf16.vlgmr.msra.gmra.mxu1 %v485_v12 }
 0x202   :  { %v563_v0 = vpop.f32.mrf.mxu1 }
 0x203   :  { %v564_v16 = vadd.f32 %v700_v14, %v563_v0 }
 0x205   :  { %v568_v28 = vmax.f32 %v564_v16, 0.0 }
 0x20a   :  { %v565_v18 = vpop.f32.mrf.mxu1 }
 0x20b   :  { %v566_v19 = vadd.f32 %v700_v14, %v565_v18 }
 0x20d   :  { %v569_v20 = vmax.f32 %v566_v19, 0.0 }
 0x20f   :  { %v570_v21 = vpack.c.bf16 %v569_v20, %v568_v28 }
 0x211   :  { %585 = vmatpush.bf16.xpose.msra.mxu2 %v570_v21 }
 0x218   :  { %586 = vmatmul.bf16.vlgmr.msra.gmra.mxu2 %v571_v22 }
 0x29b   :  { %v587_v23 = vpop.f32.mrf.mxu2 }
 0x29c   :  { %v588_v17 = vadd.f32 %v587_v23, %v576_v30 }
 0x29e   :  { %592 = vst.msk [vmem:[%s1038_s9] sm:$0xff] %vm591_vm4, %v588_v17 }
 0x2a3   :  { %v589_v24 = vpop.f32.mrf.mxu2 }
 0x2a4   :  { %597 = vsyncpa [#allocation3], 1 }
 0x2a5   :  { %598 = vsyncpa [#allocation5], 1 }

</bundles_post_ra>
